<compile_context>
chip_gen: v7x
topology: tpu7x:2x2x1
jax: 0.10.0
libtpu: 0.0.40
codegen_flags: <defaults>
</compile_context>

<pallas_src>
from functools import partial

import jax
import jax.numpy as jnp
from jax.experimental import pallas as pl
from jax.experimental.pallas import tpu as pltpu

Q_DIM = 7
IN_DIM = 2 * Q_DIM          # 14
OUT_DIM = 14
HIDDEN = 128                # hidden_dim default in the PyTorch module
TB_MAX = 4096               # keep per-step working set small enough for v7x VMEM


def _round_up(n, m):
    return ((n + m - 1) // m) * m


def pinn_mlp_kernel(q_ref, dq_ref, w1q_ref, w1d_ref, b1_ref, w2_ref, b2_ref,
                    w3_ref, b3_ref, w4_ref, b4_ref, o_ref, *, tanh_dtype):
    """Whole 4-layer MLP for one (tb, *) batch tile; weights resident in VMEM.

    Matmul operands are in the weight dtype (bf16 by default -> MXU fast
    path) with f32 accumulation; bias add is f32, tanh runs in `tanh_dtype`
    (bf16 on v6e/v7x, f32 for the exact-check / v5e path).
    """
    mm_dt = w2_ref.dtype

    def act(h_f32, b_ref):
        # f32 bias add -> tanh in tanh_dtype -> matmul operand dtype.
        return jnp.tanh((h_f32 + b_ref[...]).astype(tanh_dtype)).astype(mm_dt)

    q = q_ref[...].astype(mm_dt)
    dq = dq_ref[...].astype(mm_dt)
    # Layer 1: x = [q | dq] done as two K=7 matmuls (no in-kernel concat).
    h = (jnp.dot(q, w1q_ref[...], preferred_element_type=jnp.float32) +
         jnp.dot(dq, w1d_ref[...], preferred_element_type=jnp.float32))
    h = act(h, b1_ref)
    h = act(jnp.dot(h, w2_ref[...], preferred_element_type=jnp.float32), b2_ref)
    h = act(jnp.dot(h, w3_ref[...], preferred_element_type=jnp.float32), b3_ref)
    y = jnp.dot(h, w4_ref[...], preferred_element_type=jnp.float32)
    o_ref[...] = (y + b4_ref[...]).astype(o_ref.dtype)


def prepare_params(params, compute_dtype=jnp.bfloat16):
    """Cast/split weights once (hoist out of the per-step hot path)."""
    w1, b1, w2, b2, w3, b3, w4, b4 = params
    return (w1[:Q_DIM].astype(compute_dtype),   # w1 rows hit by q
            w1[Q_DIM:].astype(compute_dtype),   # w1 rows hit by dq
            b1.astype(jnp.float32),
            w2.astype(compute_dtype), b2.astype(jnp.float32),
            w3.astype(compute_dtype), b3.astype(jnp.float32),
            w4.astype(compute_dtype), b4.astype(jnp.float32))


def _choose_batch_tiling(B, tb):
    """Pick (tb_eff, B_pad). Large batches get >=4 even grid steps."""
    B8 = _round_up(B, 8)
    tb_eff = _round_up(min(tb, TB_MAX, B8), 8)
    if B8 >= 512:
        # >=4 steps so each megacore TensorCore (v7x) gets >=2 pipelined steps.
        while pl.cdiv(B8, tb_eff) < 4 and tb_eff > 128:
            tb_eff = max(128, _round_up(tb_eff // 2, 8))
        n_steps = pl.cdiv(B8, tb_eff)
        if n_steps % 2:
            n_steps += 1            # even count: no TC idles on a tail tile
    else:
        n_steps = pl.cdiv(B8, tb_eff)
    return tb_eff, n_steps * tb_eff


def pinn_forward(q, dq, params, *, tb=512, compute_dtype=jnp.bfloat16,
                 tanh_dtype=None):
    """Pallas-backed equivalent of PINN.forward(q, dq). Output is f32 (B, 14)."""
    if tanh_dtype is None:
        tanh_dtype = compute_dtype   # on v5e prefer tanh_dtype=jnp.float32
    (w1q, w1d, b1p, w2p, b2p, w3p, b3p, w4p, b4p) = prepare_params(
        params, compute_dtype)

    B = q.shape[0]
    tb_eff, B_pad = _choose_batch_tiling(B, tb)
    if B_pad != B:
        q = jnp.pad(q, ((0, B_pad - B), (0, 0)))
        dq = jnp.pad(dq, ((0, B_pad - B), (0, 0)))

    batch_map = lambda i: (i, 0)
    param_map = lambda i: (0, 0)   # constant -> weights stay resident in VMEM

    in_specs = [
        pl.BlockSpec((tb_eff, Q_DIM), batch_map),    # q   (natural width)
        pl.BlockSpec((tb_eff, Q_DIM), batch_map),    # dq  (natural width)
        pl.BlockSpec((Q_DIM, HIDDEN), param_map),    # w1[:7]
        pl.BlockSpec((Q_DIM, HIDDEN), param_map),    # w1[7:]
        pl.BlockSpec((1, HIDDEN), param_map),        # b1
        pl.BlockSpec((HIDDEN, HIDDEN), param_map),   # w2
        pl.BlockSpec((1, HIDDEN), param_map),        # b2
        pl.BlockSpec((HIDDEN, HIDDEN), param_map),   # w3
        pl.BlockSpec((1, HIDDEN), param_map),        # b3
        pl.BlockSpec((HIDDEN, OUT_DIM), param_map),  # w4 (natural width)
        pl.BlockSpec((1, OUT_DIM), param_map),       # b4
    ]
    out_specs = pl.BlockSpec((tb_eff, OUT_DIM), batch_map)  # natural-width out

    wbytes = jnp.dtype(compute_dtype).itemsize
    cost = pl.CostEstimate(
        flops=2 * B_pad * (IN_DIM * HIDDEN + 2 * HIDDEN * HIDDEN
                           + HIDDEN * OUT_DIM),
        transcendentals=3 * B_pad * HIDDEN,
        bytes_accessed=(2 * B_pad * Q_DIM * 4            # q, dq reads (f32)
                        + B_pad * OUT_DIM * 4            # output write (f32)
                        + (IN_DIM * HIDDEN + 2 * HIDDEN * HIDDEN
                           + HIDDEN * OUT_DIM) * wbytes  # weights
                        + (3 * HIDDEN + OUT_DIM) * 4))   # biases (f32)

    out = pl.pallas_call(
        partial(pinn_mlp_kernel, tanh_dtype=tanh_dtype),
        out_shape=jax.ShapeDtypeStruct((B_pad, OUT_DIM), jnp.float32),
        grid=(B_pad // tb_eff,),
        in_specs=in_specs,
        out_specs=out_specs,
        compiler_params=pltpu.CompilerParams(
            dimension_semantics=("parallel",)),
        cost_estimate=cost,
    )(q, dq, w1q, w1d, b1p, w2p, b2p, w3p, b3p, w4p, b4p)

    return out[:B]


def init_params(key, hidden=HIDDEN):
    """Deterministic init mimicking torch.nn.Linear (U(-1/sqrt(fan_in), ...))."""
    ks = jax.random.split(key, 9)

    def linear(kw, kb, fan_in, fan_out):
        bound = 1.0 / jnp.sqrt(fan_in)
        w = jax.random.uniform(kw, (fan_in, fan_out), jnp.float32, -bound, bound)
        b = jax.random.uniform(kb, (1, fan_out), jnp.float32, -bound, bound)
        return w, b

    w1, b1 = linear(ks[0], ks[1], IN_DIM, hidden)
    w2, b2 = linear(ks[2], ks[3], hidden, hidden)
    w3, b3 = linear(ks[4], ks[5], hidden, hidden)
    w4, b4 = linear(ks[6], ks[7], hidden, OUT_DIM)
    # dyn_params exists on the module but is unused in forward(); kept for parity.
    dyn_params = jax.random.normal(ks[8], (91,), jnp.float32)
    return (w1, b1, w2, b2, w3, b3, w4, b4), dyn_params


def reference_forward(q, dq, params):
    """Pure-JAX f32 reference of the same MLP for a correctness check."""
    x = jnp.concatenate([q, dq], axis=-1)
    w1, b1, w2, b2, w3, b3, w4, b4 = params
    h = jnp.tanh(x @ w1 + b1)
    h = jnp.tanh(h @ w2 + b2)
    h = jnp.tanh(h @ w3 + b3)
    return h @ w4 + b4


# TODO(synk): physics_loss depends on external get_M/get_C/get_G robot-dynamics
# functions not defined in the module; only forward() is implemented here.

if __name__ == "__main__":
    key = jax.random.PRNGKey(0)
    k_q, k_dq, k_p = jax.random.split(key, 3)

    B = 8
    q = jax.random.normal(k_q, (B, Q_DIM), jnp.float32)
    dq = jax.random.normal(k_dq, (B, Q_DIM), jnp.float32)

    params, _dyn_params = init_params(k_p)
    ref = reference_forward(q, dq, params)

    # Exact-path check (f32 operands + f32 tanh) against the reference.
    out_f32 = jax.block_until_ready(
        pinn_forward(q, dq, params, compute_dtype=jnp.float32))
    assert out_f32.shape == (B, OUT_DIM)
    assert jnp.allclose(out_f32, ref, atol=1e-5, rtol=1e-5), "f32 mismatch"

    # Fast path (bf16 matmul operands + bf16 tanh, f32 accumulation/output).
    out_bf16 = jax.block_until_ready(
        pinn_forward(q, dq, params, compute_dtype=jnp.bfloat16))
    assert out_bf16.shape == (B, OUT_DIM)
    assert jnp.allclose(out_bf16, ref, atol=5e-2, rtol=5e-2), "bf16 mismatch"

    # Larger / ragged batch exercises the multi-step, even-grid tiling path.
    Bn = 1000
    qn = jax.random.normal(k_q, (Bn, Q_DIM), jnp.float32)
    dqn = jax.random.normal(k_dq, (Bn, Q_DIM), jnp.float32)
    out_big = jax.block_until_ready(pinn_forward(qn, dqn, params))
    assert out_big.shape == (Bn, OUT_DIM)
    assert jnp.allclose(out_big, reference_forward(qn, dqn, params),
                        atol=5e-2, rtol=5e-2), "big-batch mismatch"

    print("KERNEL_OK")
</pallas_src>

<mosaic_0001>
module attributes {stable_mosaic.version = 11 : i64} {
  func.func @pinn_mlp_kernel(%arg0: i32, %arg1: memref<8x7xf32, #tpu.memory_space<vmem>>, %arg2: memref<8x7xf32, #tpu.memory_space<vmem>>, %arg3: memref<7x128xf32, #tpu.memory_space<vmem>>, %arg4: memref<7x128xf32, #tpu.memory_space<vmem>>, %arg5: memref<1x128xf32, #tpu.memory_space<vmem>>, %arg6: memref<128x128xf32, #tpu.memory_space<vmem>>, %arg7: memref<1x128xf32, #tpu.memory_space<vmem>>, %arg8: memref<128x128xf32, #tpu.memory_space<vmem>>, %arg9: memref<1x128xf32, #tpu.memory_space<vmem>>, %arg10: memref<128x14xf32, #tpu.memory_space<vmem>>, %arg11: memref<1x14xf32, #tpu.memory_space<vmem>>, %arg12: memref<8x14xf32, #tpu.memory_space<vmem>>) attributes {dimension_semantics = [#tpu.dimension_semantics<parallel>], iteration_bounds = array<i64: 1>, scalar_prefetch = 0 : i64, scratch_operands = 0 : i64, tpu.core_type = #tpu.core_type<tc>, window_params = [{transform_indices = @transform_0, window_bounds = array<i64: 8, 7>}, {transform_indices = @transform_1, window_bounds = array<i64: 8, 7>}, {pipeline_mode = #tpu.pipeline_mode<synchronous>, transform_indices = @transform_2, window_bounds = array<i64: 7, 128>}, {pipeline_mode = #tpu.pipeline_mode<synchronous>, transform_indices = @transform_3, window_bounds = array<i64: 7, 128>}, {pipeline_mode = #tpu.pipeline_mode<synchronous>, transform_indices = @transform_4, window_bounds = array<i64: 1, 128>}, {pipeline_mode = #tpu.pipeline_mode<synchronous>, transform_indices = @transform_5, window_bounds = array<i64: 128, 128>}, {pipeline_mode = #tpu.pipeline_mode<synchronous>, transform_indices = @transform_6, window_bounds = array<i64: 1, 128>}, {pipeline_mode = #tpu.pipeline_mode<synchronous>, transform_indices = @transform_7, window_bounds = array<i64: 128, 128>}, {pipeline_mode = #tpu.pipeline_mode<synchronous>, transform_indices = @transform_8, window_bounds = array<i64: 1, 128>}, {pipeline_mode = #tpu.pipeline_mode<synchronous>, transform_indices = @transform_9, window_bounds = array<i64: 128, 14>}, {pipeline_mode = #tpu.pipeline_mode<synchronous>, transform_indices = @transform_10, window_bounds = array<i64: 1, 14>}, {transform_indices = @transform_11, window_bounds = array<i64: 8, 14>}]} {
    %c0 = arith.constant 0 : index
    %c0_0 = arith.constant 0 : index
    %0 = vector.load %arg1[%c0, %c0_0] : memref<8x7xf32, #tpu.memory_space<vmem>>, vector<8x7xf32>
    %c0_1 = arith.constant 0 : index
    %c0_2 = arith.constant 0 : index
    %1 = vector.load %arg2[%c0_1, %c0_2] : memref<8x7xf32, #tpu.memory_space<vmem>>, vector<8x7xf32>
    %c0_3 = arith.constant 0 : index
    %c0_4 = arith.constant 0 : index
    %2 = vector.load %arg3[%c0_3, %c0_4] : memref<7x128xf32, #tpu.memory_space<vmem>>, vector<7x128xf32>
    %cst = arith.constant dense<0.000000e+00> : vector<8x128xf32>
    %3 = tpu.matmul %0, %2, %cst {dimension_numbers = #tpu.dot_dimension_numbers<[1], [0], [0], [1], [0, 0, 1, 1], [], []>} : vector<8x7xf32>, vector<7x128xf32>, vector<8x128xf32> -> vector<8x128xf32>
    %c0_5 = arith.constant 0 : index
    %c0_6 = arith.constant 0 : index
    %4 = vector.load %arg4[%c0_5, %c0_6] : memref<7x128xf32, #tpu.memory_space<vmem>>, vector<7x128xf32>
    %cst_7 = arith.constant dense<0.000000e+00> : vector<8x128xf32>
    %5 = tpu.matmul %1, %4, %cst_7 {dimension_numbers = #tpu.dot_dimension_numbers<[1], [0], [0], [1], [0, 0, 1, 1], [], []>} : vector<8x7xf32>, vector<7x128xf32>, vector<8x128xf32> -> vector<8x128xf32>
    %6 = arith.addf %3, %5 : vector<8x128xf32>
    %c0_8 = arith.constant 0 : index
    %c0_9 = arith.constant 0 : index
    %7 = vector.load %arg5[%c0_8, %c0_9] : memref<1x128xf32, #tpu.memory_space<vmem>>, vector<1x128xf32>
    %8 = vector.broadcast %7 : vector<1x128xf32> to vector<8x128xf32>
    %9 = arith.addf %6, %8 : vector<8x128xf32>
    %10 = math.tanh %9 : vector<8x128xf32>
    %c0_10 = arith.constant 0 : index
    %c0_11 = arith.constant 0 : index
    %11 = vector.load %arg6[%c0_10, %c0_11] : memref<128x128xf32, #tpu.memory_space<vmem>>, vector<128x128xf32>
    %cst_12 = arith.constant dense<0.000000e+00> : vector<8x128xf32>
    %12 = tpu.matmul %10, %11, %cst_12 {dimension_numbers = #tpu.dot_dimension_numbers<[1], [0], [0], [1], [0, 0, 1, 1], [], []>} : vector<8x128xf32>, vector<128x128xf32>, vector<8x128xf32> -> vector<8x128xf32>
    %c0_13 = arith.constant 0 : index
    %c0_14 = arith.constant 0 : index
    %13 = vector.load %arg7[%c0_13, %c0_14] : memref<1x128xf32, #tpu.memory_space<vmem>>, vector<1x128xf32>
    %14 = vector.broadcast %13 : vector<1x128xf32> to vector<8x128xf32>
    %15 = arith.addf %12, %14 : vector<8x128xf32>
    %16 = math.tanh %15 : vector<8x128xf32>
    %c0_15 = arith.constant 0 : index
    %c0_16 = arith.constant 0 : index
    %17 = vector.load %arg8[%c0_15, %c0_16] : memref<128x128xf32, #tpu.memory_space<vmem>>, vector<128x128xf32>
    %cst_17 = arith.constant dense<0.000000e+00> : vector<8x128xf32>
    %18 = tpu.matmul %16, %17, %cst_17 {dimension_numbers = #tpu.dot_dimension_numbers<[1], [0], [0], [1], [0, 0, 1, 1], [], []>} : vector<8x128xf32>, vector<128x128xf32>, vector<8x128xf32> -> vector<8x128xf32>
    %c0_18 = arith.constant 0 : index
    %c0_19 = arith.constant 0 : index
    %19 = vector.load %arg9[%c0_18, %c0_19] : memref<1x128xf32, #tpu.memory_space<vmem>>, vector<1x128xf32>
    %20 = vector.broadcast %19 : vector<1x128xf32> to vector<8x128xf32>
    %21 = arith.addf %18, %20 : vector<8x128xf32>
    %22 = math.tanh %21 : vector<8x128xf32>
    %c0_20 = arith.constant 0 : index
    %c0_21 = arith.constant 0 : index
    %23 = vector.load %arg10[%c0_20, %c0_21] : memref<128x14xf32, #tpu.memory_space<vmem>>, vector<128x14xf32>
    %cst_22 = arith.constant dense<0.000000e+00> : vector<8x14xf32>
    %24 = tpu.matmul %22, %23, %cst_22 {dimension_numbers = #tpu.dot_dimension_numbers<[1], [0], [0], [1], [0, 0, 1, 1], [], []>} : vector<8x128xf32>, vector<128x14xf32>, vector<8x14xf32> -> vector<8x14xf32>
    %c0_23 = arith.constant 0 : index
    %c0_24 = arith.constant 0 : index
    %25 = vector.load %arg11[%c0_23, %c0_24] : memref<1x14xf32, #tpu.memory_space<vmem>>, vector<1x14xf32>
    %26 = vector.broadcast %25 : vector<1x14xf32> to vector<8x14xf32>
    %27 = arith.addf %24, %26 : vector<8x14xf32>
    %c0_25 = arith.constant 0 : index
    %c0_26 = arith.constant 0 : index
    %28 = vector.load %arg12[%c0_25, %c0_26] : memref<8x14xf32, #tpu.memory_space<vmem>>, vector<8x14xf32>
    tpu.vector_store %arg12[%c0_25, %c0_26], %27 {strides = array<i32>} : memref<8x14xf32, #tpu.memory_space<vmem>>, vector<8x14xf32>,
    return
  }
  func.func @transform_0(%arg0: i32) -> (i32, i32) {
    %c0_i32 = arith.constant 0 : i32
    %c0_i32_0 = arith.constant 0 : i32
    return %arg0, %c0_i32 : i32, i32
  }
  func.func @transform_1(%arg0: i32) -> (i32, i32) {
    %c0_i32 = arith.constant 0 : i32
    %c0_i32_0 = arith.constant 0 : i32
    return %arg0, %c0_i32 : i32, i32
  }
  func.func @transform_2(%arg0: i32) -> (i32, i32) {
    %c0_i32 = arith.constant 0 : i32
    %c0_i32_0 = arith.constant 0 : i32
    %c0_i32_1 = arith.constant 0 : i32
    return %c0_i32, %c0_i32_0 : i32, i32
  }
  func.func @transform_3(%arg0: i32) -> (i32, i32) {
    %c0_i32 = arith.constant 0 : i32
    %c0_i32_0 = arith.constant 0 : i32
    %c0_i32_1 = arith.constant 0 : i32
    return %c0_i32, %c0_i32_0 : i32, i32
  }
  func.func @transform_4(%arg0: i32) -> (i32, i32) {
    %c0_i32 = arith.constant 0 : i32
    %c0_i32_0 = arith.constant 0 : i32
    %c0_i32_1 = arith.constant 0 : i32
    return %c0_i32, %c0_i32_0 : i32, i32
  }
  func.func @transform_5(%arg0: i32) -> (i32, i32) {
    %c0_i32 = arith.constant 0 : i32
    %c0_i32_0 = arith.constant 0 : i32
    %c0_i32_1 = arith.constant 0 : i32
    return %c0_i32, %c0_i32_0 : i32, i32
  }
  func.func @transform_6(%arg0: i32) -> (i32, i32) {
    %c0_i32 = arith.constant 0 : i32
    %c0_i32_0 = arith.constant 0 : i32
    %c0_i32_1 = arith.constant 0 : i32
    return %c0_i32, %c0_i32_0 : i32, i32
  }
  func.func @transform_7(%arg0: i32) -> (i32, i32) {
    %c0_i32 = arith.constant 0 : i32
    %c0_i32_0 = arith.constant 0 : i32
    %c0_i32_1 = arith.constant 0 : i32
    return %c0_i32, %c0_i32_0 : i32, i32
  }
  func.func @transform_8(%arg0: i32) -> (i32, i32) {
    %c0_i32 = arith.constant 0 : i32
    %c0_i32_0 = arith.constant 0 : i32
    %c0_i32_1 = arith.constant 0 : i32
    return %c0_i32, %c0_i32_0 : i32, i32
  }
  func.func @transform_9(%arg0: i32) -> (i32, i32) {
    %c0_i32 = arith.constant 0 : i32
    %c0_i32_0 = arith.constant 0 : i32
    %c0_i32_1 = arith.constant 0 : i32
    return %c0_i32, %c0_i32_0 : i32, i32
  }
  func.func @transform_10(%arg0: i32) -> (i32, i32) {
    %c0_i32 = arith.constant 0 : i32
    %c0_i32_0 = arith.constant 0 : i32
    %c0_i32_1 = arith.constant 0 : i32
    return %c0_i32, %c0_i32_0 : i32, i32
  }
  func.func @transform_11(%arg0: i32) -> (i32, i32) {
    %c0_i32 = arith.constant 0 : i32
    %c0_i32_0 = arith.constant 0 : i32
    return %arg0, %c0_i32 : i32, i32
  }
}

</mosaic_0001>

<bundles_post_ra>
// kernel: tpu_custom_call.1
= control target key start
LH: loop header
LB: loop body
LE: loop exit
PB: predicated region body
PF: predicated region fallthrough
CT: control target
= control target key end

     0   :  { %16 = vsyncpa [#allocation3], 0  ;;  %s1133_s0 = inlined_call_operand.vmem [shape: f32[8,7], index: 0, kind: input, shape index: {}]   ;;  %s1134_s1 = inlined_call_operand.vmem [shape: f32[8,7], index: 1, kind: input, shape index: {}]   ;;  %s1135_s2 = inlined_call_operand.vmem [shape: f32[7,128], index: 2, kind: input, shape index: {}]   ;;  %s1136_s3 = inlined_call_operand.hbm [shape: f32[7,128], index: 3, kind: input, shape index: {}]   ;;  %s1137_s4 = inlined_call_operand.vmem [shape: f32[1,128], index: 4, kind: input, shape index: {}]   ;;  %s1138_s5 = inlined_call_operand.vmem [shape: f32[128,128], index: 5, kind: input, shape index: {}]   ;;  %s1139_s6 = inlined_call_operand.vmem [shape: f32[1,128], index: 6, kind: input, shape index: {}]   ;;  %s1140_s7 = inlined_call_operand.hbm [shape: f32[128,128], index: 7, kind: input, shape index: {}]   ;;  %s1141_s8 = inlined_call_operand.vmem [shape: f32[1,128], index: 8, kind: input, shape index: {}]   ;;  %s1142_s9 = inlined_call_operand.vmem [shape: f32[128,14], index: 9, kind: input, shape index: {}]   ;;  %s1143_s10 = inlined_call_operand.vmem [shape: f32[1,14], index: 10, kind: input, shape index: {}]   ;;  %s1144_s11 = inlined_call_operand.hbm [shape: f32[8,14], index: 11, kind: output, shape index: {}]  }
   0x1   :  { %17 = vsyncpa [#allocation6], 0 }
   0x2   :  { %18 = vsyncpa [#allocation4], 0  ;;  %s867_s17 = smov [#allocation2]   ;;  %s868_s19 = smov [#allocation5]  }
   0x3   :  { %s31_s18 = sshll.u32 %s867_s17, 4  ;;  %s46_s20 = sshll.u32 %s868_s19, 4  ;;  %s32_s18 = int_to_ptr.vmem [resolvable:$true] %s31_s18  ;;  %s935_s20 = int_to_ptr.vmem [resolvable:$true] %s46_s20 }
   0x4   :  { %s795_s23 = scalar_lea.hbm %s1136_s3, 128 }
   0x5   :  { %p796_p0 = scmp.ne.s32.totalorder %s1136_s3, %s795_s23  ;;  %p799_p1 = scmp.lt.u32.totalorder %s795_s23, %s1136_s3 }
   0x7   :  { %p801_p2 = pnand %p799_p1, %p796_p0 }
   0x9   :  { %804 = shalt.err (!%p801_p2)
}
   0xa   :  { %s805_s28 = scalar_lea.vmem %s32_s18, 128  ;;  %p810_p4 = scmp.lt.s32.totalorder %s32_s18, %s32_s18 }
   0xb   :  { %p806_p3 = scmp.ne.s32.totalorder %s32_s18, %s805_s28  ;;  %p811_p5 = scmp.lt.s32.totalorder %s805_s28, %s805_s28 }
   0xd   :  { %p812_p6 = por %p811_p5, %p810_p4 }
   0xf   :  { %p813_p7 = pnand %p812_p6, %p806_p3 }
  0x11   :  { %816 = shalt.err (!%p813_p7)
}
  0x12   :  { %34 = dma.hbm_to_vmem [thread:$0]  %s1136_s3, 128, %s32_s18, [#allocation3]  }
  0x13   :  { %s817_s14 = scalar_lea.hbm %s1140_s7, 2048 }
  0x14   :  { %p818_p8 = scmp.ne.s32.totalorder %s1140_s7, %s817_s14  ;;  %p821_p9 = scmp.lt.u32.totalorder %s817_s14, %s1140_s7 }
  0x16   :  { %p823_p10 = pnand %p821_p9, %p818_p8 }
  0x18   :  { %826 = shalt.err (!%p823_p10)
}
  0x19   :  { %s827_s21 = scalar_lea.vmem %s935_s20, 2048  ;;  %p832_p12 = scmp.lt.s32.totalorder %s935_s20, %s935_s20 }
  0x1a   :  { %p828_p11 = scmp.ne.s32.totalorder %s935_s20, %s827_s21  ;;  %p833_p13 = scmp.lt.s32.totalorder %s827_s21, %s827_s21 }
  0x1c   :  { %p834_p0 = por %p833_p13, %p832_p12 }
  0x1e   :  { %p835_p1 = pnand %p834_p0, %p828_p11 }
  0x20   :  { %838 = shalt.err (!%p835_p1)
}
  0x21   :  { %s869_s3 = smov 128   ;;  %s870_s18 = smov 8  }
  0x22   :  { %52 = dma.hbm_to_vmem [thread:$0]  %s1140_s7, 2048, %s935_s20, [#allocation6], %s869_s3, %s869_s3, %s870_s18  }
  0x23   :  { %861 = dma.done.wait [#allocation3], 128  }
  0x24   :  { %862 = vsyncadd [#allocation3], 4294967168 }
  0x25   :  { %863 = dma.done.wait [#allocation6], 2048  }
  0x26   :  { %864 = vsyncadd [#allocation6], 4294965248  ;;  %v871_v0 = vmov 0.0   ;;  %vm872_vm0 = vmmov 0   ;;  %v873_v1 = vmov 0.0|0.0   ;;  %vm73_vm1 = vcmask 1046528  }
  0x27   :  { %594 = vmatprep.subr.mxu1 %v871_v0  ;;  %596 = vmatprep.mubr.msk.f32.mxu1 %vm872_vm0, %v871_v0  ;;  %vm69_vm2 = vcmask 56320   ;;  %v68_v2 = vld [vmem:[#allocation2] sm:$0x7f]  ;;  %v233_v6 = vld [vmem:[%s1138_s5 + $0x8] sm:$0xff]  ;;  %v234_v8 = vld [vmem:[%s1138_s5 + $0x10] sm:$0xff]  ;;  %vm513_vm3 = vcmask 113664  }
  0x28   :  { %709 = vmatprep.subr.bf16.mxu0 %v873_v1  ;;  %636 = vmatprep.mubr.msk.f32.mxu0 %vm872_vm0, %v871_v0  ;;  %v66_v3 = vld [vmem:[%s1134_s1] sm:$0xff]  ;;  %v235_v9 = vld [vmem:[%s1138_s5 + $0x18] sm:$0xff]  ;;  %v237_v13 = vld [vmem:[%s1138_s5 + $0x28] sm:$0xff] }
  0x29   :  { %v67_v4 = vld [vmem:[%s1135_s2] sm:$0x7f]  ;;  %595 = vmatpush3.msk.msra.mxu1 %vm73_vm1, %v68_v2  ;;  %v713_v11 = vpack.c.bf16 %v235_v9, %v234_v8  ;;  %v238_v15 = vld [vmem:[%s1138_s5 + $0x30] sm:$0xff]  ;;  %v239_v16 = vld [vmem:[%s1138_s5 + $0x38] sm:$0xff] }
  0x2a   :  { %v232_v5 = vld [vmem:[%s1138_s5] sm:$0xff]  ;;  %597 = vmatmul.mubr.msk.f32.vlgmr.msra.gmra.mrb[0].mxu1 %vm69_vm2, %v66_v3  ;;  %599 = vmatprep.subr.mxu1 %v871_v0  ;;  %v719_v17 = vpack.c.bf16 %v239_v16, %v238_v15  ;;  %v241_v19 = vld [vmem:[%s1138_s5 + $0x48] sm:$0xff]  ;;  %v242_v21 = vld [vmem:[%s1138_s5 + $0x50] sm:$0xff] }
  0x2b   :  { %v710_v7 = vpack.c.bf16 %v233_v6, %v232_v5  ;;  %600 = vmatpush3.msk.msra.mxu1 %vm73_vm1, %v67_v4  ;;  %601 = vmatprep.mubr.msk.f32.mxu1 %vm872_vm0, %v871_v0  ;;  %v65_v10 = vld [vmem:[%s1133_s0] sm:$0xff]  ;;  %v243_v22 = vld [vmem:[%s1138_s5 + $0x58] sm:$0xff]  ;;  %v245_v25 = vld [vmem:[%s1138_s5 + $0x68] sm:$0xff] }
  0x2c   :  { %733 = vmatprep.subr.bf16.mxu1 %v873_v1  ;;  %v236_v12 = vld [vmem:[%s1138_s5 + $0x20] sm:$0xff]  ;;  %v725_v23 = vpack.c.bf16 %v243_v22, %v242_v21  ;;  %v246_v27 = vld [vmem:[%s1138_s5 + $0x70] sm:$0xff]  ;;  %v247_v28 = vld [vmem:[%s1138_s5 + $0x78] sm:$0xff] }
  0x2d   :  { %711 = vmatpush3.bf16.msra.mxu0 %v710_v7  ;;  %v716_v14 = vpack.c.bf16 %v237_v13, %v236_v12  ;;  %v240_v18 = vld [vmem:[%s1138_s5 + $0x40] sm:$0xff]  ;;  %v731_v29 = vpack.c.bf16 %v247_v28, %v246_v27  ;;  %v326_v30 = vld [vmem:[#allocation5] sm:$0xff]  ;;  %v327_v31 = vld [vmem:[#allocation5 + $0x8] sm:$0xff] }
  0x2e   :  { %712 = vmatprep.subr.bf16.mxu0 %v873_v1  ;;  %602 = vmatmul.mubr.msk.f32.vlgmr.msra.gmra.mrb[2].mxu1 %vm69_vm2, %v65_v10  ;;  %v722_v20 = vpack.c.bf16 %v241_v19, %v240_v18  ;;  %v244_v24 = vld [vmem:[%s1138_s5 + $0x60] sm:$0xff]  ;;  %v328_v32 = vld [vmem:[#allocation5 + $0x10] sm:$0xff]  ;;  %v734_v33 = vpack.c.bf16 %v327_v31, %v326_v30  ;;  %v330_v36 = vld [vmem:[#allocation5 + $0x20] sm:$0xff] }
  0x2f   :  { %671 = vmatprep.mubr.msk.f32.mxu1 %vm872_vm0, %v871_v0  ;;  %v728_v26 = vpack.c.bf16 %v245_v25, %v244_v24  ;;  %v329_v34 = vld [vmem:[#allocation5 + $0x18] sm:$0xff]  ;;  %v331_v37 = vld [vmem:[#allocation5 + $0x28] sm:$0xff]  ;;  %v332_v39 = vld [vmem:[#allocation5 + $0x30] sm:$0xff] }
  0x30   :  { %735 = vmatpush3.bf16.msra.mxu1 %v734_v33  ;;  %v737_v35 = vpack.c.bf16 %v329_v34, %v328_v32  ;;  %v740_v38 = vpack.c.bf16 %v331_v37, %v330_v36  ;;  %v333_v40 = vld [vmem:[#allocation5 + $0x38] sm:$0xff]  ;;  %v334_v42 = vld [vmem:[#allocation5 + $0x40] sm:$0xff]  ;;  %v335_v43 = vld [vmem:[#allocation5 + $0x48] sm:$0xff] }
  0x31   :  { %714 = vmatpush3.bf16.msra.mxu0 %v713_v11  ;;  %736 = vmatprep.subr.bf16.mxu1 %v873_v1  ;;  %v743_v41 = vpack.c.bf16 %v333_v40, %v332_v39  ;;  %v746_v44 = vpack.c.bf16 %v335_v43, %v334_v42  ;;  %v535_v48 = vld [vmem:[%s1137_s4] ss:$0 sm:$0xff]  ;;  %v336_v53 = vld [vmem:[#allocation5 + $0x50] sm:$0xff]  ;;  %v338_v56 = vld [vmem:[#allocation5 + $0x60] sm:$0xff] }
  0x32   :  { %715 = vmatprep.subr.bf16.mxu0 %v873_v1  ;;  %v337_v54 = vld [vmem:[#allocation5 + $0x58] sm:$0xff]  ;;  %v339_v57 = vld [vmem:[#allocation5 + $0x68] sm:$0xff]  ;;  %v340_v59 = vld [vmem:[#allocation5 + $0x70] sm:$0xff] }
  0x33   :  { %v749_v55 = vpack.c.bf16 %v337_v54, %v336_v53  ;;  %v752_v58 = vpack.c.bf16 %v339_v57, %v338_v56  ;;  %v341_v60 = vld [vmem:[#allocation5 + $0x78] sm:$0xff]  ;;  %v421_v63 = vld [vmem:[%s1142_s9 + $0x8] sm:$0xff]  ;;  %v423_v3 = vld [vmem:[%s1142_s9 + $0x18] sm:$0xff] }
  0x34   :  { %738 = vmatpush3.bf16.msra.mxu1 %v737_v35  ;;  %v755_v61 = vpack.c.bf16 %v341_v60, %v340_v59  ;;  %v420_v62 = vld [vmem:[%s1142_s9] sm:$0xff]  ;;  %v425_v6 = vld [vmem:[%s1142_s9 + $0x28] sm:$0xff]  ;;  %v426_v8 = vld [vmem:[%s1142_s9 + $0x30] sm:$0xff] }
  0x35   :  { %717 = vmatpush3.bf16.msra.mxu0 %v716_v14  ;;  %739 = vmatprep.subr.bf16.mxu1 %v873_v1  ;;  %v758_v2 = vpack.c.bf16 %v421_v63, %v420_v62  ;;  %v424_v5 = vld [vmem:[%s1142_s9 + $0x20] sm:$0xff]  ;;  %v427_v9 = vld [vmem:[%s1142_s9 + $0x38] sm:$0xff]  ;;  %v429_v12 = vld [vmem:[%s1142_s9 + $0x48] sm:$0xff] }
  0x36   :  { %718 = vmatprep.subr.bf16.mxu0 %v873_v1  ;;  %v764_v7 = vpack.c.bf16 %v425_v6, %v424_v5  ;;  %v767_v10 = vpack.c.bf16 %v427_v9, %v426_v8  ;;  %v428_v11 = vld [vmem:[%s1142_s9 + $0x40] sm:$0xff]  ;;  %v430_v19 = vld [vmem:[%s1142_s9 + $0x50] sm:$0xff] }
  0x37   :  { %v770_v13 = vpack.c.bf16 %v429_v12, %v428_v11  ;;  %v536_v14 = vld [vmem:[%s1139_s6] ss:$0 sm:$0xff]  ;;  %v434_v25 = vld [vmem:[%s1142_s9 + $0x70] sm:$0xff] }
  0x38   :  { %741 = vmatpush3.bf16.msra.mxu1 %v740_v38  ;;  %v432_v22 = vld [vmem:[%s1142_s9 + $0x60] sm:$0xff] }
  0x39   :  { %720 = vmatpush3.bf16.msra.mxu0 %v719_v17  ;;  %742 = vmatprep.subr.bf16.mxu1 %v873_v1  ;;  %v537_v28 = vld [vmem:[%s1141_s8] ss:$0 sm:$0xff] }
  0x3a   :  { %721 = vmatprep.subr.bf16.mxu0 %v873_v1  ;;  %v538_v33 = vld [vmem:[%s1143_s10] ss:$0 sm:$0xff] }
  0x3c   :  { %744 = vmatpush3.bf16.msra.mxu1 %v743_v41 }
  0x3d   :  { %723 = vmatpush3.bf16.msra.mxu0 %v722_v20  ;;  %745 = vmatprep.subr.bf16.mxu1 %v873_v1  ;;  %v431_v20 = vld [vmem:[%s1142_s9 + $0x58] sm:$0xff] }
  0x3e   :  { %724 = vmatprep.subr.bf16.mxu0 %v873_v1  ;;  %v773_v21 = vpack.c.bf16 %v431_v20, %v430_v19 }
  0x40   :  { %747 = vmatpush3.bf16.msra.mxu1 %v746_v44 }
  0x41   :  { %726 = vmatpush3.bf16.msra.mxu0 %v725_v23  ;;  %748 = vmatprep.subr.bf16.mxu1 %v873_v1  ;;  %v433_v23 = vld [vmem:[%s1142_s9 + $0x68] sm:$0xff] }
  0x42   :  { %727 = vmatprep.subr.bf16.mxu0 %v873_v1  ;;  %v776_v24 = vpack.c.bf16 %v433_v23, %v432_v22 }
  0x44   :  { %750 = vmatpush3.bf16.msra.mxu1 %v749_v55 }
  0x45   :  { %729 = vmatpush3.bf16.msra.mxu0 %v728_v26  ;;  %751 = vmatprep.subr.bf16.mxu1 %v873_v1  ;;  %v435_v26 = vld [vmem:[%s1142_s9 + $0x78] sm:$0xff] }
  0x46   :  { %730 = vmatprep.subr.bf16.mxu0 %v873_v1  ;;  %v779_v27 = vpack.c.bf16 %v435_v26, %v434_v25 }
  0x48   :  { %753 = vmatpush3.bf16.msra.mxu1 %v752_v58 }
  0x49   :  { %732 = vmatpush3.bf16.msra.mxu0 %v731_v29  ;;  %754 = vmatprep.subr.bf16.mxu1 %v873_v1 }
  0x4a   :  { %757 = vmatprep.subr.bf16.mxu0 %v873_v1 }
  0x4c   :  { %756 = vmatpush3.bf16.msra.mxu1 %v755_v61 }
  0xfd   :  { %v143_v45 = vpop.f32.mrb[0].mxu1 }
  0xfe   :  { %v598_v46 = vpop.f32.mrb[1].mxu1 }
 0x101   :  { %v219_v47 = vpop.f32.mrb[2].mxu1 }
 0x102   :  { %v220_v49 = vadd.f32 %v219_v47, %v143_v45  ;;  %v603_v50 = vpop.f32.mrb[3].mxu1 }
 0x104   :  { %v230_v51 = vadd.f32 %v535_v48, %v220_v49 }
 0x106   :  { %789 = vtanh.f32 %v230_v51 }
 0x110   :  { %v790_v52 = vpop.eup %789 }
 0x111   :  { %637 = vmatmul.mubr.f32.vlgmr.msra.gmra.mrb[0].mxu0 %v790_v52 }
 0x112   :  { %706 = vmatprep.mubr.msk.f32.mxu0 %vm872_vm0, %v871_v0  ;;  %v422_v0 = vld [vmem:[%s1142_s9 + $0x10] sm:$0xff]  ;;  %759 = vmatpush3.bf16.msra.mxu0 %v758_v2  ;;  %s874_s9 = smov [#allocation7]  }
 0x113   :  { %v761_v4 = vpack.c.bf16 %v423_v3, %v422_v0  ;;  %760 = vmatprep.subr.bf16.mxu0 %v873_v1  ;;  %s521_s20 = sshll.u32 %s874_s9, 4  ;;  %s522_s20 = int_to_ptr.vmem [resolvable:$true] %s521_s20 }
 0x114   :  { %s839_s24 = scalar_lea.vmem %s522_s20, 128  ;;  %p844_p3 = scmp.lt.s32.totalorder %s522_s20, %s522_s20 }
 0x115   :  { %p840_p2 = scmp.ne.s32.totalorder %s522_s20, %s839_s24  ;;  %p845_p4 = scmp.lt.s32.totalorder %s839_s24, %s839_s24 }
 0x116   :  { %762 = vmatpush3.bf16.msra.mxu0 %v761_v4 }
 0x117   :  { %763 = vmatprep.subr.bf16.mxu0 %v873_v1  ;;  %p846_p5 = por %p845_p4, %p844_p3 }
 0x119   :  { %p847_p6 = pnand %p846_p5, %p840_p2 }
 0x11a   :  { %765 = vmatpush3.bf16.msra.mxu0 %v764_v7 }
 0x11b   :  { %766 = vmatprep.subr.bf16.mxu0 %v873_v1 }
 0x11e   :  { %768 = vmatpush3.bf16.msra.mxu0 %v767_v10 }
 0x11f   :  { %769 = vmatprep.subr.bf16.mxu0 %v873_v1 }
 0x122   :  { %771 = vmatpush3.bf16.msra.mxu0 %v770_v13 }
 0x123   :  { %772 = vmatprep.subr.bf16.mxu0 %v873_v1 }
 0x126   :  { %774 = vmatpush3.bf16.msra.mxu0 %v773_v21 }
 0x127   :  { %775 = vmatprep.subr.bf16.mxu0 %v873_v1 }
 0x12a   :  { %777 = vmatpush3.bf16.msra.mxu0 %v776_v24 }
 0x12b   :  { %778 = vmatprep.subr.bf16.mxu0 %v873_v1 }
 0x12e   :  { %780 = vmatpush3.bf16.msra.mxu0 %v779_v27 }
 0x1e4   :  { %v321_v15 = vpop.f32.mrb[0].mxu0 }
 0x1e5   :  { %v322_v16 = vadd.f32 %v536_v14, %v321_v15  ;;  %v638_v17 = vpop.f32.mrb[1].mxu0 }
 0x1e7   :  { %791 = vtanh.f32 %v322_v16 }
 0x1f1   :  { %v792_v18 = vpop.eup %791 }
 0x1f2   :  { %672 = vmatmul.mubr.f32.vlgmr.msra.gmra.mrb[4].mxu1 %v792_v18 }
 0x2c5   :  { %v415_v29 = vpop.f32.mrb[4].mxu1 }
 0x2c6   :  { %v416_v30 = vadd.f32 %v537_v28, %v415_v29  ;;  %v673_v31 = vpop.f32.mrb[5].mxu1 }
 0x2c8   :  { %793 = vtanh.f32 %v416_v30 }
 0x2d2   :  { %v794_v32 = vpop.eup %793 }
 0x2d3   :  { %707 = vmatmul.mubr.f32.vlgmr.msra.gmra.mrb[2].mxu0 %v794_v32 }
 0x3a6   :  { %v509_v34 = vpop.f32.mrb[2].mxu0 }
 0x3a7   :  { %v510_v1 = vadd.f32 %v538_v33, %v509_v34  ;;  %v708_v35 = vpop.f32.mrb[3].mxu0 }
 0x3a9   :  { %514 = vst.msk [vmem:[#allocation7] sm:$0xff] %vm513_vm3, %v510_v1 }
 0x3aa   :  { %850 = shalt.err (!%p847_p6)
}
 0x3ab   :  { %s851_s26 = scalar_lea.hbm %s1144_s11, 128 }
 0x3ac   :  { %p852_p7 = scmp.ne.s32.totalorder %s1144_s11, %s851_s26  ;;  %p855_p8 = scmp.lt.u32.totalorder %s851_s26, %s1144_s11 }
 0x3ae   :  { %p857_p9 = pnand %p855_p8, %p852_p7 }
 0x3b0   :  { %860 = shalt.err (!%p857_p9)
}
 0x3b1   :  { %524 = dma.vmem_to_hbm [thread:$0]  %s522_s20, 128, %s1144_s11, [#allocation4]  }
 0x3b2   :  { %865 = dma.done.wait [#allocation4], 128  }
 0x3b3   :  { %866 = vsyncadd [#allocation4], 4294967168 }
 0x3b4   :  { %528 = vsyncpa [#allocation3], 1 }
 0x3b5   :  { %529 = vsyncpa [#allocation6], 1 }
 0x3b6   :  { %530 = vsyncpa [#allocation4], 1 }

</bundles_post_ra>
